<compile_context>
chip_gen: v7x
topology: tpu7x:2x2x1
jax: 0.10.0
libtpu: 0.0.40
codegen_flags: <defaults>
</compile_context>

<pallas_src>
import jax
import jax.numpy as jnp
from jax.experimental import pallas as pl
from jax.experimental.pallas import tpu as pltpu


def actor_kernel(state_ref,
                 w1_ref, b1_ref,
                 w2_ref, b2_ref,
                 wmu_ref, bmu_ref,
                 wsig_ref, bsig_ref,
                 mu_ref, sigma_ref):
    # Cast activations to the weight dtype so bf16 weights get a native bf16
    # MXU pass (no-op when everything is f32). Accumulation stays f32.
    x = state_ref[...].astype(w1_ref.dtype)

    # fc1 + ReLU
    h1 = jnp.dot(x, w1_ref[...], preferred_element_type=jnp.float32) + b1_ref[...]
    h1 = jnp.maximum(h1, 0.0).astype(w2_ref.dtype)

    # fc2 + ReLU
    h2 = jnp.dot(h1, w2_ref[...], preferred_element_type=jnp.float32) + b2_ref[...]
    h2 = jnp.maximum(h2, 0.0).astype(wmu_ref.dtype)

    # mu head: tanh
    mu = jnp.tanh(
        jnp.dot(h2, wmu_ref[...], preferred_element_type=jnp.float32) + bmu_ref[...])
    mu_ref[...] = mu.astype(mu_ref.dtype)

    # sigma head: exp(tanh(.))
    log_sig = jnp.tanh(
        jnp.dot(h2, wsig_ref[...], preferred_element_type=jnp.float32) + bsig_ref[...])
    sigma_ref[...] = jnp.exp(log_sig).astype(sigma_ref.dtype)


def _choose_tb(batch, tb_max):
    """Batch tile: multiple of 8, big enough to amortize per-step overhead,
    and (when the batch allows) >= 2 grid steps so v7x's 2 TCs both get work."""
    bp8 = ((batch + 7) // 8) * 8
    if bp8 <= 8:
        return 8
    if bp8 <= 2 * tb_max:
        half = (((bp8 + 1) // 2) + 7) // 8 * 8   # even-ish 2-way split
        return min(half, tb_max)
    return tb_max


def prepare_params(params, *, use_bf16=False):
    """One-time parameter prep, hoisted out of the per-step forward.

    Weights are stored [in, out] (transposed vs. torch's [out, in]); biases
    [1, out] in f32. Optionally casts weights to bf16 (halves weight DMA and
    uses the native bf16 MXU path) while keeping f32 accumulation/biases.
    """
    w1, b1, w2, b2, wmu, bmu, wsig, bsig = params
    wd = jnp.bfloat16 if use_bf16 else jnp.float32
    return (w1.astype(wd), b1.astype(jnp.float32),
            w2.astype(wd), b2.astype(jnp.float32),
            wmu.astype(wd), bmu.astype(jnp.float32),
            wsig.astype(wd), bsig.astype(jnp.float32))


def actor_forward(state, params, *, tb_max=1024):
    """ActorNetwork forward pass in one Pallas kernel. Returns (mu, sigma)."""
    w1, b1, w2, b2, wmu, bmu, wsig, bsig = params
    B, in_dims = state.shape
    fc1_dims = w1.shape[1]
    fc2_dims = w2.shape[1]
    n_outs = wmu.shape[1]

    tb_max = max(8, (tb_max // 8) * 8)
    TB = _choose_tb(B, tb_max)
    grid = (pl.cdiv(B, TB),)

    # Whole-array blocks with constant index_maps: weights/biases are fetched
    # once and stay VMEM-resident across all (parallel) grid steps.
    const = lambda arr: pl.BlockSpec(arr.shape, lambda i, _n=arr.ndim: (0,) * _n)

    nbytes = lambda a: a.size * a.dtype.itemsize
    param_bytes = sum(nbytes(a) for a in params)

    # Advisory cost estimate: lets XLA overlap surrounding PPO ops with this
    # short custom call instead of serializing around it.
    flops = 2 * B * (in_dims * fc1_dims + fc1_dims * fc2_dims + 2 * fc2_dims * n_outs)
    cost = pl.CostEstimate(
        flops=int(flops),
        transcendentals=int(3 * B * n_outs),                  # 2x tanh + 1x exp per row
        bytes_accessed=int(nbytes(state) + 2 * B * n_outs * 4 + param_bytes),
    )

    # VMEM budget (double-buffered tiles + weights). Only raise the scoped
    # limit when the conservative v5e default (16 MiB) would be exceeded;
    # cap below the v7x 64 MiB physical ceiling.
    vmem_bytes = (2 * TB * in_dims * state.dtype.itemsize     # state tiles
                  + 2 * 2 * TB * n_outs * 4                   # mu/sigma tiles
                  + 2 * param_bytes)                           # weights/biases
    compiler_kwargs = dict(dimension_semantics=("parallel",))
    if vmem_bytes > (16 << 20):
        compiler_kwargs["vmem_limit_bytes"] = int(min(vmem_bytes * 5 // 4, 60 << 20))

    mu, sigma = pl.pallas_call(
        actor_kernel,
        out_shape=(jax.ShapeDtypeStruct((B, n_outs), jnp.float32),
                   jax.ShapeDtypeStruct((B, n_outs), jnp.float32)),
        grid=grid,
        in_specs=[
            pl.BlockSpec((TB, in_dims), lambda i: (i, 0)),    # state tile (ragged last block clipped by Pallas)
            const(w1), const(b1),
            const(w2), const(b2),
            const(wmu), const(bmu),
            const(wsig), const(bsig),
        ],
        out_specs=[
            pl.BlockSpec((TB, n_outs), lambda i: (i, 0)),     # mu    (unpadded, full last dim)
            pl.BlockSpec((TB, n_outs), lambda i: (i, 0)),     # sigma (unpadded, full last dim)
        ],
        compiler_params=pltpu.CompilerParams(**compiler_kwargs),
        cost_estimate=cost,
    )(state, w1, b1, w2, b2, wmu, bmu, wsig, bsig)
    return mu, sigma


def init_params(key, input_dims, fc1_dims, fc2_dims, n_outs):
    """Deterministic parameter init (PyTorch-Linear-style uniform bounds)."""
    def linear(key, fan_in, fan_out):
        k_w, k_b = jax.random.split(key)
        bound = 1.0 / jnp.sqrt(fan_in)
        # stored as [in, out] (already transposed vs torch's [out, in])
        w = jax.random.uniform(k_w, (fan_in, fan_out), jnp.float32, -bound, bound)
        b = jax.random.uniform(k_b, (1, fan_out), jnp.float32, -bound, bound)
        return w, b

    k1, k2, k3, k4 = jax.random.split(key, 4)
    w1, b1 = linear(k1, input_dims, fc1_dims)
    w2, b2 = linear(k2, fc1_dims, fc2_dims)
    wmu, bmu = linear(k3, fc2_dims, n_outs)
    wsig, bsig = linear(k4, fc2_dims, n_outs)
    return (w1, b1, w2, b2, wmu, bmu, wsig, bsig)


def actor_forward_ref(state, params):
    """Pure-JAX reference for correctness checking."""
    w1, b1, w2, b2, wmu, bmu, wsig, bsig = params
    h1 = jnp.maximum(state @ w1 + b1, 0.0)
    h2 = jnp.maximum(h1 @ w2 + b2, 0.0)
    mu = jnp.tanh(h2 @ wmu + bmu)
    sigma = jnp.exp(jnp.tanh(h2 @ wsig + bsig))
    return mu, sigma


if __name__ == "__main__":
    # Small shapes consistent with the module's constructor args.
    batch = 8
    input_dims = 16
    fc1_dims = 32
    fc2_dims = 32
    n_outs = 4

    key = jax.random.PRNGKey(0)
    k_state, k_params = jax.random.split(key)

    state = jax.random.normal(k_state, (batch, input_dims), jnp.float32)
    raw_params = init_params(k_params, input_dims, fc1_dims, fc2_dims, n_outs)
    params = prepare_params(raw_params)                       # one-time prep (f32)

    mu, sigma = actor_forward(state, params)
    jax.block_until_ready((mu, sigma))

    mu_ref, sigma_ref = actor_forward_ref(state, raw_params)
    assert mu.shape == (batch, n_outs) and sigma.shape == (batch, n_outs)
    assert jnp.allclose(mu, mu_ref, atol=1e-5, rtol=1e-5)
    assert jnp.allclose(sigma, sigma_ref, atol=1e-5, rtol=1e-5)

    # Non-aligned, multi-tile batch: exercises the ragged-last-block grid path
    # (no wrapper-side padding) and the 2-way tile split.
    big_state = jax.random.normal(k_state, (517, input_dims), jnp.float32)
    mu_b, sigma_b = actor_forward(big_state, params)
    jax.block_until_ready((mu_b, sigma_b))
    mu_b_ref, sigma_b_ref = actor_forward_ref(big_state, raw_params)
    assert mu_b.shape == (517, n_outs) and sigma_b.shape == (517, n_outs)
    assert jnp.allclose(mu_b, mu_b_ref, atol=1e-5, rtol=1e-5)
    assert jnp.allclose(sigma_b, sigma_b_ref, atol=1e-5, rtol=1e-5)

    # Optional bf16-weight path (f32 accumulation), behind a loose tolerance gate.
    params_bf16 = prepare_params(raw_params, use_bf16=True)
    mu_h, sigma_h = actor_forward(big_state, params_bf16)
    jax.block_until_ready((mu_h, sigma_h))
    assert jnp.allclose(mu_h, mu_b_ref, atol=1e-1, rtol=1e-1)
    assert jnp.allclose(sigma_h, sigma_b_ref, atol=1e-1, rtol=1e-1)

    print("KERNEL_OK")
</pallas_src>

<mosaic_0001>
module attributes {stable_mosaic.version = 11 : i64} {
  func.func @actor_kernel(%arg0: i32, %arg1: memref<8x16xf32, #tpu.memory_space<vmem>>, %arg2: memref<16x32xf32, #tpu.memory_space<vmem>>, %arg3: memref<1x32xf32, #tpu.memory_space<vmem>>, %arg4: memref<32x32xf32, #tpu.memory_space<vmem>>, %arg5: memref<1x32xf32, #tpu.memory_space<vmem>>, %arg6: memref<32x4xf32, #tpu.memory_space<vmem>>, %arg7: memref<1x4xf32, #tpu.memory_space<vmem>>, %arg8: memref<32x4xf32, #tpu.memory_space<vmem>>, %arg9: memref<1x4xf32, #tpu.memory_space<vmem>>, %arg10: memref<8x4xf32, #tpu.memory_space<vmem>>, %arg11: memref<8x4xf32, #tpu.memory_space<vmem>>) attributes {dimension_semantics = [#tpu.dimension_semantics<parallel>], iteration_bounds = array<i64: 1>, scalar_prefetch = 0 : i64, scratch_operands = 0 : i64, tpu.core_type = #tpu.core_type<tc>, window_params = [{transform_indices = @transform_0, window_bounds = array<i64: 8, 16>}, {pipeline_mode = #tpu.pipeline_mode<synchronous>, transform_indices = @transform_1, window_bounds = array<i64: 16, 32>}, {pipeline_mode = #tpu.pipeline_mode<synchronous>, transform_indices = @transform_2, window_bounds = array<i64: 1, 32>}, {pipeline_mode = #tpu.pipeline_mode<synchronous>, transform_indices = @transform_3, window_bounds = array<i64: 32, 32>}, {pipeline_mode = #tpu.pipeline_mode<synchronous>, transform_indices = @transform_4, window_bounds = array<i64: 1, 32>}, {pipeline_mode = #tpu.pipeline_mode<synchronous>, transform_indices = @transform_5, window_bounds = array<i64: 32, 4>}, {pipeline_mode = #tpu.pipeline_mode<synchronous>, transform_indices = @transform_6, window_bounds = array<i64: 1, 4>}, {pipeline_mode = #tpu.pipeline_mode<synchronous>, transform_indices = @transform_7, window_bounds = array<i64: 32, 4>}, {pipeline_mode = #tpu.pipeline_mode<synchronous>, transform_indices = @transform_8, window_bounds = array<i64: 1, 4>}, {transform_indices = @transform_9, window_bounds = array<i64: 8, 4>}, {transform_indices = @transform_10, window_bounds = array<i64: 8, 4>}]} {
    %c0 = arith.constant 0 : index
    %c0_0 = arith.constant 0 : index
    %0 = vector.load %arg1[%c0, %c0_0] : memref<8x16xf32, #tpu.memory_space<vmem>>, vector<8x16xf32>
    %c0_1 = arith.constant 0 : index
    %c0_2 = arith.constant 0 : index
    %1 = vector.load %arg2[%c0_1, %c0_2] : memref<16x32xf32, #tpu.memory_space<vmem>>, vector<16x32xf32>
    %cst = arith.constant dense<0.000000e+00> : vector<8x32xf32>
    %2 = tpu.matmul %0, %1, %cst {dimension_numbers = #tpu.dot_dimension_numbers<[1], [0], [0], [1], [0, 0, 1, 1], [], []>} : vector<8x16xf32>, vector<16x32xf32>, vector<8x32xf32> -> vector<8x32xf32>
    %c0_3 = arith.constant 0 : index
    %c0_4 = arith.constant 0 : index
    %3 = vector.load %arg3[%c0_3, %c0_4] : memref<1x32xf32, #tpu.memory_space<vmem>>, vector<1x32xf32>
    %4 = vector.broadcast %3 : vector<1x32xf32> to vector<8x32xf32>
    %5 = arith.addf %2, %4 : vector<8x32xf32>
    %cst_5 = arith.constant 0.000000e+00 : f32
    %6 = vector.broadcast %cst_5 : f32 to vector<8x32xf32>
    %7 = arith.maximumf %5, %6 : vector<8x32xf32>
    %c0_6 = arith.constant 0 : index
    %c0_7 = arith.constant 0 : index
    %8 = vector.load %arg4[%c0_6, %c0_7] : memref<32x32xf32, #tpu.memory_space<vmem>>, vector<32x32xf32>
    %cst_8 = arith.constant dense<0.000000e+00> : vector<8x32xf32>
    %9 = tpu.matmul %7, %8, %cst_8 {dimension_numbers = #tpu.dot_dimension_numbers<[1], [0], [0], [1], [0, 0, 1, 1], [], []>} : vector<8x32xf32>, vector<32x32xf32>, vector<8x32xf32> -> vector<8x32xf32>
    %c0_9 = arith.constant 0 : index
    %c0_10 = arith.constant 0 : index
    %10 = vector.load %arg5[%c0_9, %c0_10] : memref<1x32xf32, #tpu.memory_space<vmem>>, vector<1x32xf32>
    %11 = vector.broadcast %10 : vector<1x32xf32> to vector<8x32xf32>
    %12 = arith.addf %9, %11 : vector<8x32xf32>
    %cst_11 = arith.constant 0.000000e+00 : f32
    %13 = vector.broadcast %cst_11 : f32 to vector<8x32xf32>
    %14 = arith.maximumf %12, %13 : vector<8x32xf32>
    %c0_12 = arith.constant 0 : index
    %c0_13 = arith.constant 0 : index
    %15 = vector.load %arg6[%c0_12, %c0_13] : memref<32x4xf32, #tpu.memory_space<vmem>>, vector<32x4xf32>
    %cst_14 = arith.constant dense<0.000000e+00> : vector<8x4xf32>
    %16 = tpu.matmul %14, %15, %cst_14 {dimension_numbers = #tpu.dot_dimension_numbers<[1], [0], [0], [1], [0, 0, 1, 1], [], []>} : vector<8x32xf32>, vector<32x4xf32>, vector<8x4xf32> -> vector<8x4xf32>
    %c0_15 = arith.constant 0 : index
    %c0_16 = arith.constant 0 : index
    %17 = vector.load %arg7[%c0_15, %c0_16] : memref<1x4xf32, #tpu.memory_space<vmem>>, vector<1x4xf32>
    %18 = vector.broadcast %17 : vector<1x4xf32> to vector<8x4xf32>
    %19 = arith.addf %16, %18 : vector<8x4xf32>
    %20 = math.tanh %19 : vector<8x4xf32>
    %c0_17 = arith.constant 0 : index
    %c0_18 = arith.constant 0 : index
    %21 = vector.load %arg10[%c0_17, %c0_18] : memref<8x4xf32, #tpu.memory_space<vmem>>, vector<8x4xf32>
    tpu.vector_store %arg10[%c0_17, %c0_18], %20 {strides = array<i32>} : memref<8x4xf32, #tpu.memory_space<vmem>>, vector<8x4xf32>,
    %c0_19 = arith.constant 0 : index
    %c0_20 = arith.constant 0 : index
    %22 = vector.load %arg8[%c0_19, %c0_20] : memref<32x4xf32, #tpu.memory_space<vmem>>, vector<32x4xf32>
    %cst_21 = arith.constant dense<0.000000e+00> : vector<8x4xf32>
    %23 = tpu.matmul %14, %22, %cst_21 {dimension_numbers = #tpu.dot_dimension_numbers<[1], [0], [0], [1], [0, 0, 1, 1], [], []>} : vector<8x32xf32>, vector<32x4xf32>, vector<8x4xf32> -> vector<8x4xf32>
    %c0_22 = arith.constant 0 : index
    %c0_23 = arith.constant 0 : index
    %24 = vector.load %arg9[%c0_22, %c0_23] : memref<1x4xf32, #tpu.memory_space<vmem>>, vector<1x4xf32>
    %25 = vector.broadcast %24 : vector<1x4xf32> to vector<8x4xf32>
    %26 = arith.addf %23, %25 : vector<8x4xf32>
    %27 = math.tanh %26 : vector<8x4xf32>
    %28 = math.exp %27 : vector<8x4xf32>
    %c0_24 = arith.constant 0 : index
    %c0_25 = arith.constant 0 : index
    %29 = vector.load %arg11[%c0_24, %c0_25] : memref<8x4xf32, #tpu.memory_space<vmem>>, vector<8x4xf32>
    tpu.vector_store %arg11[%c0_24, %c0_25], %28 {strides = array<i32>} : memref<8x4xf32, #tpu.memory_space<vmem>>, vector<8x4xf32>,
    return
  }
  func.func @transform_0(%arg0: i32) -> (i32, i32) {
    %c0_i32 = arith.constant 0 : i32
    %c0_i32_0 = arith.constant 0 : i32
    return %arg0, %c0_i32 : i32, i32
  }
  func.func @transform_1(%arg0: i32) -> (i32, i32) {
    %c0_i32 = arith.constant 0 : i32
    %c0_i32_0 = arith.constant 0 : i32
    %c0_i32_1 = arith.constant 0 : i32
    return %c0_i32, %c0_i32_0 : i32, i32
  }
  func.func @transform_2(%arg0: i32) -> (i32, i32) {
    %c0_i32 = arith.constant 0 : i32
    %c0_i32_0 = arith.constant 0 : i32
    %c0_i32_1 = arith.constant 0 : i32
    return %c0_i32, %c0_i32_0 : i32, i32
  }
  func.func @transform_3(%arg0: i32) -> (i32, i32) {
    %c0_i32 = arith.constant 0 : i32
    %c0_i32_0 = arith.constant 0 : i32
    %c0_i32_1 = arith.constant 0 : i32
    return %c0_i32, %c0_i32_0 : i32, i32
  }
  func.func @transform_4(%arg0: i32) -> (i32, i32) {
    %c0_i32 = arith.constant 0 : i32
    %c0_i32_0 = arith.constant 0 : i32
    %c0_i32_1 = arith.constant 0 : i32
    return %c0_i32, %c0_i32_0 : i32, i32
  }
  func.func @transform_5(%arg0: i32) -> (i32, i32) {
    %c0_i32 = arith.constant 0 : i32
    %c0_i32_0 = arith.constant 0 : i32
    %c0_i32_1 = arith.constant 0 : i32
    return %c0_i32, %c0_i32_0 : i32, i32
  }
  func.func @transform_6(%arg0: i32) -> (i32, i32) {
    %c0_i32 = arith.constant 0 : i32
    %c0_i32_0 = arith.constant 0 : i32
    %c0_i32_1 = arith.constant 0 : i32
    return %c0_i32, %c0_i32_0 : i32, i32
  }
  func.func @transform_7(%arg0: i32) -> (i32, i32) {
    %c0_i32 = arith.constant 0 : i32
    %c0_i32_0 = arith.constant 0 : i32
    %c0_i32_1 = arith.constant 0 : i32
    return %c0_i32, %c0_i32_0 : i32, i32
  }
  func.func @transform_8(%arg0: i32) -> (i32, i32) {
    %c0_i32 = arith.constant 0 : i32
    %c0_i32_0 = arith.constant 0 : i32
    %c0_i32_1 = arith.constant 0 : i32
    return %c0_i32, %c0_i32_0 : i32, i32
  }
  func.func @transform_9(%arg0: i32) -> (i32, i32) {
    %c0_i32 = arith.constant 0 : i32
    %c0_i32_0 = arith.constant 0 : i32
    return %arg0, %c0_i32 : i32, i32
  }
  func.func @transform_10(%arg0: i32) -> (i32, i32) {
    %c0_i32 = arith.constant 0 : i32
    %c0_i32_0 = arith.constant 0 : i32
    return %arg0, %c0_i32 : i32, i32
  }
}

</mosaic_0001>

<bundles_post_ra>
// kernel: tpu_custom_call.1
= control target key start
LH: loop header
LB: loop body
LE: loop exit
PB: predicated region body
PF: predicated region fallthrough
CT: control target
= control target key end

     0   :  { %v481_v0 = vmov 0.0|0.0   ;;  %vm482_vm0 = vmmov 0   ;;  %v483_v3 = vmov 0.0   ;;  %vm44_vm1 = vcmask 130048   ;;  %s609_s1 = inlined_call_operand.vmem [shape: f32[16,32], index: 1, kind: input, shape index: {}]   ;;  %s610_s3 = inlined_call_operand.vmem [shape: f32[32,32], index: 3, kind: input, shape index: {}]   ;;  %s611_s0 = inlined_call_operand.vmem [shape: f32[8,16], index: 0, kind: input, shape index: {}]   ;;  %s612_s5 = inlined_call_operand.vmem [shape: f32[32,4], index: 5, kind: input, shape index: {}]   ;;  %s613_s2 = inlined_call_operand.vmem [shape: f32[1,32], index: 2, kind: input, shape index: {}]   ;;  %s614_s7 = inlined_call_operand.vmem [shape: f32[32,4], index: 7, kind: input, shape index: {}]   ;;  %s615_s4 = inlined_call_operand.vmem [shape: f32[1,32], index: 4, kind: input, shape index: {}]   ;;  %s616_s6 = inlined_call_operand.vmem [shape: f32[1,4], index: 6, kind: input, shape index: {}]   ;;  %s617_s8 = inlined_call_operand.vmem [shape: f32[1,4], index: 8, kind: input, shape index: {}]   ;;  %s618_s9 = inlined_call_operand.vmem [shape: f32[8,4], index: 9, kind: output, shape index: {0}]   ;;  %s619_s10 = inlined_call_operand.vmem [shape: f32[8,4], index: 10, kind: output, shape index: {1}]  }
   0x1   :  { %451 = vmatprep.subr.bf16.mxu0 %v481_v0  ;;  %v35_v1 = vld [vmem:[%s609_s1] sm:$0xff]  ;;  %v36_v2 = vld [vmem:[%s609_s1 + $0x8] sm:$0xff]  ;;  %415 = vmatprep.mubr.msk.f32.mxu0 %vm482_vm0, %v483_v3  ;;  %v121_v9 = vld [vmem:[%s610_s3 + $0x10] sm:$0xff]  ;;  %vm130_vm2 = vcmask 261120   ;;  %vm290_vm3 = vcmask 31744  }
   0x2   :  { %v452_v4 = vpack.c.bf16 %v36_v2, %v35_v1  ;;  %454 = vmatprep.subr.bf16.mxu1 %v481_v0  ;;  %v119_v5 = vld [vmem:[%s610_s3] sm:$0xff]  ;;  %v120_v6 = vld [vmem:[%s610_s3 + $0x8] sm:$0xff]  ;;  %426 = vmatprep.mubr.msk.f32.mxu1 %vm482_vm0, %v483_v3  ;;  %v122_v10 = vld [vmem:[%s610_s3 + $0x18] sm:$0xff] }
   0x3   :  { %v455_v7 = vpack.c.bf16 %v120_v6, %v119_v5  ;;  %v34_v8 = vld [vmem:[%s611_s0] sm:$0xff]  ;;  %v458_v11 = vpack.c.bf16 %v122_v10, %v121_v9  ;;  %v206_v13 = vld [vmem:[%s612_s5 + $0x8] sm:$0xff]  ;;  %v207_v23 = vld [vmem:[%s612_s5 + $0x10] sm:$0xff] }
   0x4   :  { %453 = vmatpush3.bf16.msra.mxu0 %v452_v4  ;;  %v205_v12 = vld [vmem:[%s612_s5] sm:$0xff]  ;;  %v293_v17 = vld [vmem:[%s614_s7 + $0x8] sm:$0xff]  ;;  %v208_v24 = vld [vmem:[%s612_s5 + $0x18] sm:$0xff] }
   0x5   :  { %456 = vmatpush3.bf16.msra.mxu1 %v455_v7  ;;  %460 = vmatprep.subr.bf16.mxu0 %v481_v0  ;;  %v461_v14 = vpack.c.bf16 %v206_v13, %v205_v12  ;;  %v385_v15 = vld [vmem:[%s613_s2] ss:$0 sm:$0xff]  ;;  %v294_v25 = vld [vmem:[%s614_s7 + $0x10] sm:$0xff]  ;;  %v464_v26 = vpack.c.bf16 %v208_v24, %v207_v23  ;;  %v295_v27 = vld [vmem:[%s614_s7 + $0x18] sm:$0xff] }
   0x6   :  { %457 = vmatprep.subr.bf16.mxu1 %v481_v0  ;;  %v292_v16 = vld [vmem:[%s614_s7] sm:$0xff]  ;;  %v470_v28 = vpack.c.bf16 %v295_v27, %v294_v25 }
   0x7   :  { %416 = vmatmul.mubr.msk.f32.vlgmr.msra.gmra.mrb[0].mxu0 %vm44_vm1, %v34_v8  ;;  %v467_v21 = vpack.c.bf16 %v293_v17, %v292_v16  ;;  %v387_v29 = vld [vmem:[%s615_s4] ss:$0 sm:$0xff] }
   0x8   :  { %437 = vmatprep.mubr.msk.f32.mxu0 %vm482_vm0, %v483_v3  ;;  %462 = vmatpush3.bf16.msra.mxu0 %v461_v14  ;;  %v389_v34 = vld [vmem:[%s616_s6] ss:$0 sm:$0xff] }
   0x9   :  { %459 = vmatpush3.bf16.msra.mxu1 %v458_v11  ;;  %463 = vmatprep.subr.bf16.mxu0 %v481_v0  ;;  %v391_v35 = vld [vmem:[%s617_s8] ss:$0 sm:$0xff] }
   0xa   :  { %466 = vmatprep.subr.bf16.mxu1 %v481_v0 }
   0xc   :  { %465 = vmatpush3.bf16.msra.mxu0 %v464_v26 }
  0xda   :  { %v114_v18 = vpop.f32.mrb[0].mxu0 }
  0xdb   :  { %v115_v19 = vadd.f32 %v385_v15, %v114_v18  ;;  %v417_v20 = vpop.f32.mrb[1].mxu0 }
  0xdd   :  { %v118_v22 = vmax.f32 %v115_v19, 0.0 }
  0xdf   :  { %427 = vmatmul.mubr.msk.f32.vlgmr.msra.gmra.mrb[0].mxu1 %vm130_vm2, %v118_v22 }
  0xe0   :  { %468 = vmatpush3.bf16.msra.mxu1 %v467_v21  ;;  %448 = vmatprep.mubr.msk.f32.mxu1 %vm482_vm0, %v483_v3 }
  0xe1   :  { %469 = vmatprep.subr.bf16.mxu1 %v481_v0 }
  0xe4   :  { %471 = vmatpush3.bf16.msra.mxu1 %v470_v28 }
 0x1b2   :  { %v200_v30 = vpop.f32.mrb[0].mxu1 }
 0x1b3   :  { %v201_v31 = vadd.f32 %v387_v29, %v200_v30  ;;  %v428_v32 = vpop.f32.mrb[1].mxu1 }
 0x1b5   :  { %v204_v33 = vmax.f32 %v201_v31, 0.0 }
 0x1b7   :  { %438 = vmatmul.mubr.msk.f32.vlgmr.msra.gmra.mrb[2].mxu0 %vm130_vm2, %v204_v33  ;;  %449 = vmatmul.mubr.msk.f32.vlgmr.msra.gmra.mrb[2].mxu1 %vm130_vm2, %v204_v33 }
 0x28a   :  { %v285_v36 = vpop.f32.mrb[2].mxu0  ;;  %v369_v37 = vpop.f32.mrb[2].mxu1 }
 0x28b   :  { %v286_v38 = vadd.f32 %v389_v34, %v285_v36  ;;  %v370_v39 = vadd.f32 %v391_v35, %v369_v37  ;;  %v439_v40 = vpop.f32.mrb[3].mxu0  ;;  %v450_v41 = vpop.f32.mrb[3].mxu1 }
 0x28d   :  { %475 = vtanh.f32 %v286_v38 }
 0x28e   :  { %477 = vtanh.f32 %v370_v39 }
 0x297   :  { %v476_v42 = vpop.eup %475 }
 0x298   :  { %v478_v43 = vpop.eup %477  ;;  %291 = vst.msk [vmem:[%s618_s9] sm:$0xff] %vm290_vm3, %v476_v42 }
 0x299   :  { %v374_v44 = vmul.f32 1.442695, %v478_v43 }
 0x29b   :  { %479 = vpow2.f32 %v374_v44 }
 0x2a5   :  { %v480_v45 = vpop.eup %479 }
 0x2a6   :  { %376 = vst.msk [vmem:[%s619_s10] sm:$0xff] %vm290_vm3, %v480_v45 }

</bundles_post_ra>
